<compile_context>
chip_gen: v7x
topology: tpu7x:2x2x1
jax: 0.10.0
libtpu: 0.0.40
codegen_flags: <defaults>
</compile_context>

<pallas_src>
import functools
import math

import jax
import jax.numpy as jnp
from jax.experimental import pallas as pl
from jax.experimental.pallas import tpu as pltpu

HIDDEN = 64                      # per-network hidden width; fused width = 128
FUSED = 2 * HIDDEN
HALF_LOG_2PI = 0.5 * math.log(2.0 * math.pi)


def actor_critic_kernel(obs_ref, noise_ref,
                        w1_ref, b1_ref, w2_ref, b2_ref, w3_ref, b3_ref,
                        logstd_ref, out_ref, *, action_dim):
    A = action_dim
    obs = obs_ref[...]

    # Fused layer 1: obs @ [w1a | w1c] -> [ha | hc]   (TM, 128)
    h = jnp.tanh(jnp.dot(obs, w1_ref[...],
                         preferred_element_type=jnp.float32) + b1_ref[...])
    # Fused layer 2: block-diagonal 128x128 -> [ha2 | hc2]   (TM, 128)
    h = jnp.tanh(jnp.dot(h, w2_ref[...],
                         preferred_element_type=jnp.float32) + b2_ref[...])
    # Fused head: block-diagonal 128x(A+1) -> [mean | value]   (TM, A+1)
    head = jnp.dot(h, w3_ref[...],
                   preferred_element_type=jnp.float32) + b3_ref[...]

    mean = head[:, :A]
    value = head[:, A:A + 1]

    # Normal(mean, exp(logstd)): reparameterized sample with pre-drawn N(0,1) noise.
    logstd = logstd_ref[...]                      # (1, A) broadcasts over rows
    std = jnp.exp(logstd)
    noise = noise_ref[...]                        # (TM, A)
    action = mean + std * noise
    # log N(action | mean, std) = -0.5*z^2 - logstd - 0.5*log(2*pi), z = noise
    lp = -0.5 * noise * noise - logstd - HALF_LOG_2PI
    logprob = jnp.sum(lp, axis=1, keepdims=True)  # (TM, 1)

    # Single output slab: [action | logprob | value]  (TM, A+2)
    out_ref[:, :A] = action
    out_ref[:, A:A + 1] = logprob
    out_ref[:, A + 1:A + 2] = value


def init_params(key, obs_dim, action_dim):
    """PyTorch-style uniform(-1/sqrt(fan_in), 1/sqrt(fan_in)) init.

    Weights stored as (in, out) (transposed vs. torch's (out, in))."""
    def linear(k, fan_in, fan_out):
        kw, kb = jax.random.split(k)
        bound = 1.0 / math.sqrt(fan_in)
        w = jax.random.uniform(kw, (fan_in, fan_out), jnp.float32, -bound, bound)
        b = jax.random.uniform(kb, (1, fan_out), jnp.float32, -bound, bound)
        return w, b

    ks = jax.random.split(key, 6)
    w1a, b1a = linear(ks[0], obs_dim, HIDDEN)
    w2a, b2a = linear(ks[1], HIDDEN, HIDDEN)
    w3a, b3a = linear(ks[2], HIDDEN, action_dim)
    w1c, b1c = linear(ks[3], obs_dim, HIDDEN)
    w2c, b2c = linear(ks[4], HIDDEN, HIDDEN)
    w3c, b3c = linear(ks[5], HIDDEN, 1)
    logstd = jnp.zeros((1, action_dim), jnp.float32)
    return dict(w1a=w1a, b1a=b1a, w2a=w2a, b2a=b2a, w3a=w3a, b3a=b3a,
                w1c=w1c, b1c=b1c, w2c=w2c, b2c=b2c, w3c=w3c, b3c=b3c,
                logstd=logstd)


def pack_params(p, action_dim):
    """Host-side packing of actor+critic weights into fused / block-diagonal mats."""
    A = action_dim
    w1 = jnp.concatenate([p["w1a"], p["w1c"]], axis=1)            # (obs_dim, 128)
    b1 = jnp.concatenate([p["b1a"], p["b1c"]], axis=1)            # (1, 128)
    w2 = jnp.zeros((FUSED, FUSED), jnp.float32)
    w2 = w2.at[:HIDDEN, :HIDDEN].set(p["w2a"]).at[HIDDEN:, HIDDEN:].set(p["w2c"])
    b2 = jnp.concatenate([p["b2a"], p["b2c"]], axis=1)            # (1, 128)
    w3 = jnp.zeros((FUSED, A + 1), jnp.float32)
    w3 = w3.at[:HIDDEN, :A].set(p["w3a"]).at[HIDDEN:, A:].set(p["w3c"])
    b3 = jnp.concatenate([p["b3a"], p["b3c"]], axis=1)            # (1, A+1)
    return dict(w1=w1, b1=b1, w2=w2, b2=b2, w3=w3, b3=b3, logstd=p["logstd"])


def actor_critic_forward(obs, packed, noise, *, tile_m=512):
    """Returns (action (B,A), log_prob (B,), value (B,1)) — matches torch module."""
    B, obs_dim = obs.shape
    A = noise.shape[1]
    TM = B if B <= tile_m else tile_m             # full-batch block at toy sizes
    grid = (pl.cdiv(B, TM),)

    def row_spec(ncols):                          # batch-tiled activations/outputs
        return pl.BlockSpec((TM, ncols), lambda i: (i, 0))

    def pinned(arr):                              # weights resident across grid steps
        return pl.BlockSpec(arr.shape, lambda i: (0, 0))

    flops = 2 * B * (obs_dim * FUSED + FUSED * FUSED + FUSED * (A + 1))
    transcendentals = B * (2 * FUSED + A)         # two tanh layers of 128 + exp
    bytes_accessed = 4 * (obs.size + noise.size + B * (A + 2)
                          + sum(int(v.size) for v in packed.values()))

    out = pl.pallas_call(
        functools.partial(actor_critic_kernel, action_dim=A),
        out_shape=jax.ShapeDtypeStruct((B, A + 2), jnp.float32),
        grid=grid,
        in_specs=[row_spec(obs_dim), row_spec(A),
                  pinned(packed["w1"]), pinned(packed["b1"]),
                  pinned(packed["w2"]), pinned(packed["b2"]),
                  pinned(packed["w3"]), pinned(packed["b3"]),
                  pinned(packed["logstd"])],
        out_specs=row_spec(A + 2),
        compiler_params=pltpu.CompilerParams(dimension_semantics=("parallel",)),
        cost_estimate=pl.CostEstimate(flops=flops,
                                      transcendentals=transcendentals,
                                      bytes_accessed=bytes_accessed),
    )(obs, noise,
      packed["w1"], packed["b1"], packed["w2"], packed["b2"],
      packed["w3"], packed["b3"], packed["logstd"])

    action = out[:, :A]
    log_prob = out[:, A]
    value = out[:, A + 1:A + 2]
    return action, log_prob, value


if __name__ == "__main__":
    batch, obs_dim, action_dim = 8, 16, 4

    root = jax.random.PRNGKey(0)
    k_params, k_obs, k_noise = jax.random.split(root, 3)

    params = init_params(k_params, obs_dim, action_dim)
    packed = pack_params(params, action_dim)
    obs = jax.random.normal(k_obs, (batch, obs_dim), jnp.float32)
    # Standard-normal noise drawn outside the kernel (reparameterized sampling).
    noise = jax.random.normal(k_noise, (batch, action_dim), jnp.float32)

    action, log_prob, value = actor_critic_forward(obs, packed, noise)
    jax.block_until_ready((action, log_prob, value))

    # Pure-JAX reference on the ORIGINAL (unfused) weights.
    def ref(obs):
        h = jnp.tanh(obs @ params["w1a"] + params["b1a"])
        h = jnp.tanh(h @ params["w2a"] + params["b2a"])
        mean = h @ params["w3a"] + params["b3a"]
        std = jnp.exp(params["logstd"])
        act = mean + std * noise
        lp = (-0.5 * noise ** 2 - params["logstd"] - HALF_LOG_2PI).sum(1)
        hc = jnp.tanh(obs @ params["w1c"] + params["b1c"])
        hc = jnp.tanh(hc @ params["w2c"] + params["b2c"])
        val = hc @ params["w3c"] + params["b3c"]
        return act, lp, val

    a_ref, lp_ref, v_ref = ref(obs)
    assert jnp.allclose(action, a_ref, atol=1e-4), "action mismatch"
    assert jnp.allclose(log_prob, lp_ref, atol=1e-4), "log_prob mismatch"
    assert jnp.allclose(value, v_ref, atol=1e-4), "value mismatch"
    assert action.shape == (batch, action_dim)
    assert log_prob.shape == (batch,)
    assert value.shape == (batch, 1)

    print("KERNEL_OK")
</pallas_src>

<mosaic_0001>
module attributes {stable_mosaic.version = 11 : i64} {
  func.func @actor_critic_kernel(%arg0: i32, %arg1: memref<8x16xf32, #tpu.memory_space<vmem>>, %arg2: memref<8x4xf32, #tpu.memory_space<vmem>>, %arg3: memref<16x128xf32, #tpu.memory_space<vmem>>, %arg4: memref<1x128xf32, #tpu.memory_space<vmem>>, %arg5: memref<128x128xf32, #tpu.memory_space<vmem>>, %arg6: memref<1x128xf32, #tpu.memory_space<vmem>>, %arg7: memref<128x5xf32, #tpu.memory_space<vmem>>, %arg8: memref<1x5xf32, #tpu.memory_space<vmem>>, %arg9: memref<1x4xf32, #tpu.memory_space<vmem>>, %arg10: memref<8x6xf32, #tpu.memory_space<vmem>>) attributes {dimension_semantics = [#tpu.dimension_semantics<parallel>], iteration_bounds = array<i64: 1>, scalar_prefetch = 0 : i64, scratch_operands = 0 : i64, tpu.core_type = #tpu.core_type<tc>, window_params = [{transform_indices = @transform_0, window_bounds = array<i64: 8, 16>}, {transform_indices = @transform_1, window_bounds = array<i64: 8, 4>}, {pipeline_mode = #tpu.pipeline_mode<synchronous>, transform_indices = @transform_2, window_bounds = array<i64: 16, 128>}, {pipeline_mode = #tpu.pipeline_mode<synchronous>, transform_indices = @transform_3, window_bounds = array<i64: 1, 128>}, {pipeline_mode = #tpu.pipeline_mode<synchronous>, transform_indices = @transform_4, window_bounds = array<i64: 128, 128>}, {pipeline_mode = #tpu.pipeline_mode<synchronous>, transform_indices = @transform_5, window_bounds = array<i64: 1, 128>}, {pipeline_mode = #tpu.pipeline_mode<synchronous>, transform_indices = @transform_6, window_bounds = array<i64: 128, 5>}, {pipeline_mode = #tpu.pipeline_mode<synchronous>, transform_indices = @transform_7, window_bounds = array<i64: 1, 5>}, {pipeline_mode = #tpu.pipeline_mode<synchronous>, transform_indices = @transform_8, window_bounds = array<i64: 1, 4>}, {transform_indices = @transform_9, window_bounds = array<i64: 8, 6>}]} {
    %c0 = arith.constant 0 : index
    %c0_0 = arith.constant 0 : index
    %0 = vector.load %arg1[%c0, %c0_0] : memref<8x16xf32, #tpu.memory_space<vmem>>, vector<8x16xf32>
    %c0_1 = arith.constant 0 : index
    %c0_2 = arith.constant 0 : index
    %1 = vector.load %arg3[%c0_1, %c0_2] : memref<16x128xf32, #tpu.memory_space<vmem>>, vector<16x128xf32>
    %cst = arith.constant dense<0.000000e+00> : vector<8x128xf32>
    %2 = tpu.matmul %0, %1, %cst {dimension_numbers = #tpu.dot_dimension_numbers<[1], [0], [0], [1], [0, 0, 1, 1], [], []>} : vector<8x16xf32>, vector<16x128xf32>, vector<8x128xf32> -> vector<8x128xf32>
    %c0_3 = arith.constant 0 : index
    %c0_4 = arith.constant 0 : index
    %3 = vector.load %arg4[%c0_3, %c0_4] : memref<1x128xf32, #tpu.memory_space<vmem>>, vector<1x128xf32>
    %4 = vector.broadcast %3 : vector<1x128xf32> to vector<8x128xf32>
    %5 = arith.addf %2, %4 : vector<8x128xf32>
    %6 = math.tanh %5 : vector<8x128xf32>
    %c0_5 = arith.constant 0 : index
    %c0_6 = arith.constant 0 : index
    %7 = vector.load %arg5[%c0_5, %c0_6] : memref<128x128xf32, #tpu.memory_space<vmem>>, vector<128x128xf32>
    %cst_7 = arith.constant dense<0.000000e+00> : vector<8x128xf32>
    %8 = tpu.matmul %6, %7, %cst_7 {dimension_numbers = #tpu.dot_dimension_numbers<[1], [0], [0], [1], [0, 0, 1, 1], [], []>} : vector<8x128xf32>, vector<128x128xf32>, vector<8x128xf32> -> vector<8x128xf32>
    %c0_8 = arith.constant 0 : index
    %c0_9 = arith.constant 0 : index
    %9 = vector.load %arg6[%c0_8, %c0_9] : memref<1x128xf32, #tpu.memory_space<vmem>>, vector<1x128xf32>
    %10 = vector.broadcast %9 : vector<1x128xf32> to vector<8x128xf32>
    %11 = arith.addf %8, %10 : vector<8x128xf32>
    %12 = math.tanh %11 : vector<8x128xf32>
    %c0_10 = arith.constant 0 : index
    %c0_11 = arith.constant 0 : index
    %13 = vector.load %arg7[%c0_10, %c0_11] : memref<128x5xf32, #tpu.memory_space<vmem>>, vector<128x5xf32>
    %cst_12 = arith.constant dense<0.000000e+00> : vector<8x5xf32>
    %14 = tpu.matmul %12, %13, %cst_12 {dimension_numbers = #tpu.dot_dimension_numbers<[1], [0], [0], [1], [0, 0, 1, 1], [], []>} : vector<8x128xf32>, vector<128x5xf32>, vector<8x5xf32> -> vector<8x5xf32>
    %c0_13 = arith.constant 0 : index
    %c0_14 = arith.constant 0 : index
    %15 = vector.load %arg8[%c0_13, %c0_14] : memref<1x5xf32, #tpu.memory_space<vmem>>, vector<1x5xf32>
    %16 = vector.broadcast %15 : vector<1x5xf32> to vector<8x5xf32>
    %17 = arith.addf %14, %16 : vector<8x5xf32>
    %18 = vector.extract_strided_slice %17 {offsets = [0, 0], sizes = [8, 4], strides = [1, 1]} : vector<8x5xf32> to vector<8x4xf32>
    %19 = vector.extract_strided_slice %17 {offsets = [0, 4], sizes = [8, 1], strides = [1, 1]} : vector<8x5xf32> to vector<8x1xf32>
    %c0_15 = arith.constant 0 : index
    %c0_16 = arith.constant 0 : index
    %20 = vector.load %arg9[%c0_15, %c0_16] : memref<1x4xf32, #tpu.memory_space<vmem>>, vector<1x4xf32>
    %21 = math.exp %20 : vector<1x4xf32>
    %c0_17 = arith.constant 0 : index
    %c0_18 = arith.constant 0 : index
    %22 = vector.load %arg2[%c0_17, %c0_18] : memref<8x4xf32, #tpu.memory_space<vmem>>, vector<8x4xf32>
    %23 = vector.broadcast %21 : vector<1x4xf32> to vector<8x4xf32>
    %24 = arith.mulf %23, %22 : vector<8x4xf32>
    %25 = arith.addf %18, %24 : vector<8x4xf32>
    %cst_19 = arith.constant -5.000000e-01 : f32
    %26 = vector.broadcast %cst_19 : f32 to vector<8x4xf32>
    %27 = arith.mulf %26, %22 : vector<8x4xf32>
    %28 = arith.mulf %27, %22 : vector<8x4xf32>
    %29 = vector.broadcast %20 : vector<1x4xf32> to vector<8x4xf32>
    %30 = arith.subf %28, %29 : vector<8x4xf32>
    %cst_20 = arith.constant 0.918938517 : f32
    %31 = vector.broadcast %cst_20 : f32 to vector<8x4xf32>
    %32 = arith.subf %30, %31 : vector<8x4xf32>
    %cst_21 = arith.constant dense<0.000000e+00> : vector<8xf32>
    %33 = vector.multi_reduction <add>, %32, %cst_21 [1] : vector<8x4xf32> to vector<8xf32>
    %34 = vector.shape_cast %33 : vector<8xf32> to vector<8x1xf32>
    %c0_22 = arith.constant 0 : index
    %c0_23 = arith.constant 0 : index
    %35 = vector.load %arg10[%c0_22, %c0_23] : memref<8x6xf32, #tpu.memory_space<vmem>>, vector<8x4xf32>
    tpu.vector_store %arg10[%c0_22, %c0_23], %25 {strides = array<i32>} : memref<8x6xf32, #tpu.memory_space<vmem>>, vector<8x4xf32>,
    %c0_24 = arith.constant 0 : index
    %c4 = arith.constant 4 : index
    %36 = vector.load %arg10[%c0_24, %c4] : memref<8x6xf32, #tpu.memory_space<vmem>>, vector<8x1xf32>
    tpu.vector_store %arg10[%c0_24, %c4], %34 {strides = array<i32>} : memref<8x6xf32, #tpu.memory_space<vmem>>, vector<8x1xf32>,
    %c0_25 = arith.constant 0 : index
    %c5 = arith.constant 5 : index
    %37 = vector.load %arg10[%c0_25, %c5] : memref<8x6xf32, #tpu.memory_space<vmem>>, vector<8x1xf32>
    tpu.vector_store %arg10[%c0_25, %c5], %19 {strides = array<i32>} : memref<8x6xf32, #tpu.memory_space<vmem>>, vector<8x1xf32>,
    return
  }
  func.func @transform_0(%arg0: i32) -> (i32, i32) {
    %c0_i32 = arith.constant 0 : i32
    %c0_i32_0 = arith.constant 0 : i32
    return %arg0, %c0_i32 : i32, i32
  }
  func.func @transform_1(%arg0: i32) -> (i32, i32) {
    %c0_i32 = arith.constant 0 : i32
    %c0_i32_0 = arith.constant 0 : i32
    return %arg0, %c0_i32 : i32, i32
  }
  func.func @transform_2(%arg0: i32) -> (i32, i32) {
    %c0_i32 = arith.constant 0 : i32
    %c0_i32_0 = arith.constant 0 : i32
    %c0_i32_1 = arith.constant 0 : i32
    return %c0_i32, %c0_i32_0 : i32, i32
  }
  func.func @transform_3(%arg0: i32) -> (i32, i32) {
    %c0_i32 = arith.constant 0 : i32
    %c0_i32_0 = arith.constant 0 : i32
    %c0_i32_1 = arith.constant 0 : i32
    return %c0_i32, %c0_i32_0 : i32, i32
  }
  func.func @transform_4(%arg0: i32) -> (i32, i32) {
    %c0_i32 = arith.constant 0 : i32
    %c0_i32_0 = arith.constant 0 : i32
    %c0_i32_1 = arith.constant 0 : i32
    return %c0_i32, %c0_i32_0 : i32, i32
  }
  func.func @transform_5(%arg0: i32) -> (i32, i32) {
    %c0_i32 = arith.constant 0 : i32
    %c0_i32_0 = arith.constant 0 : i32
    %c0_i32_1 = arith.constant 0 : i32
    return %c0_i32, %c0_i32_0 : i32, i32
  }
  func.func @transform_6(%arg0: i32) -> (i32, i32) {
    %c0_i32 = arith.constant 0 : i32
    %c0_i32_0 = arith.constant 0 : i32
    %c0_i32_1 = arith.constant 0 : i32
    return %c0_i32, %c0_i32_0 : i32, i32
  }
  func.func @transform_7(%arg0: i32) -> (i32, i32) {
    %c0_i32 = arith.constant 0 : i32
    %c0_i32_0 = arith.constant 0 : i32
    %c0_i32_1 = arith.constant 0 : i32
    return %c0_i32, %c0_i32_0 : i32, i32
  }
  func.func @transform_8(%arg0: i32) -> (i32, i32) {
    %c0_i32 = arith.constant 0 : i32
    %c0_i32_0 = arith.constant 0 : i32
    %c0_i32_1 = arith.constant 0 : i32
    return %c0_i32, %c0_i32_0 : i32, i32
  }
  func.func @transform_9(%arg0: i32) -> (i32, i32) {
    %c0_i32 = arith.constant 0 : i32
    %c0_i32_0 = arith.constant 0 : i32
    return %arg0, %c0_i32 : i32, i32
  }
}

</mosaic_0001>

<bundles_post_ra>
// kernel: tpu_custom_call.1
= control target key start
LH: loop header
LB: loop body
LE: loop exit
PB: predicated region body
PF: predicated region fallthrough
CT: control target
= control target key end

     0   :  { %v559_v2 = vmov 0.0|0.0   ;;  %vm560_vm0 = vmmov 0   ;;  %v561_v4 = vmov 0.0   ;;  %vm43_vm1 = vcmask 130048   ;;  %s768_s0 = inlined_call_operand.vmem [shape: f32[8,16], index: 0, kind: input, shape index: {}]   ;;  %s769_s1 = inlined_call_operand.vmem [shape: f32[8,4], index: 1, kind: input, shape index: {}]   ;;  %s770_s2 = inlined_call_operand.vmem [shape: f32[16,128], index: 2, kind: input, shape index: {}]   ;;  %s771_s3 = inlined_call_operand.vmem [shape: f32[1,128], index: 3, kind: input, shape index: {}]   ;;  %s772_s4 = inlined_call_operand.vmem [shape: f32[128,128], index: 4, kind: input, shape index: {}]   ;;  %s773_s5 = inlined_call_operand.vmem [shape: f32[1,128], index: 5, kind: input, shape index: {}]   ;;  %s774_s6 = inlined_call_operand.vmem [shape: f32[128,5], index: 6, kind: input, shape index: {}]   ;;  %s775_s7 = inlined_call_operand.vmem [shape: f32[1,5], index: 7, kind: input, shape index: {}]   ;;  %s776_s8 = inlined_call_operand.vmem [shape: f32[1,4], index: 8, kind: input, shape index: {}]   ;;  %s777_s9 = inlined_call_operand.hbm [shape: f32[8,6], index: 9, kind: output, shape index: {}]  }
   0x1   :  { %v34_v0 = vld [vmem:[%s770_s2] sm:$0xff]  ;;  %v35_v1 = vld [vmem:[%s770_s2 + $0x8] sm:$0xff]  ;;  %473 = vmatprep.subr.bf16.mxu0 %v559_v2  ;;  %400 = vmatprep.mubr.msk.f32.mxu0 %vm560_vm0, %v561_v4  ;;  %v120_v7 = vld [vmem:[%s772_s4 + $0x10] sm:$0xff] }
   0x2   :  { %v474_v3 = vpack.c.bf16 %v35_v1, %v34_v0  ;;  %v118_v5 = vld [vmem:[%s772_s4] sm:$0xff]  ;;  %v119_v6 = vld [vmem:[%s772_s4 + $0x8] sm:$0xff]  ;;  %476 = vmatprep.subr.bf16.mxu1 %v559_v2  ;;  %v121_v9 = vld [vmem:[%s772_s4 + $0x18] sm:$0xff]  ;;  %435 = vmatprep.mubr.msk.f32.mxu1 %vm560_vm0, %v561_v4 }
   0x3   :  { %v477_v8 = vpack.c.bf16 %v119_v6, %v118_v5  ;;  %v33_v10 = vld [vmem:[%s768_s0] sm:$0xff]  ;;  %v480_v11 = vpack.c.bf16 %v121_v9, %v120_v7 }
   0x4   :  { %475 = vmatpush3.bf16.msra.mxu0 %v474_v3 }
   0x5   :  { %478 = vmatpush3.bf16.msra.mxu1 %v477_v8  ;;  %500 = vmatprep.subr.bf16.mxu0 %v559_v2 }
   0x6   :  { %14 = vsyncpa [#allocation3], 0  ;;  %479 = vmatprep.subr.bf16.mxu1 %v559_v2  ;;  %v122_v12 = vld [vmem:[%s772_s4 + $0x20] sm:$0xff]  ;;  %v123_v13 = vld [vmem:[%s772_s4 + $0x28] sm:$0xff]  ;;  %v310_v60 = vlaneseq  ;;  %vm327_vm2 = vcmask 31744   ;;  %vm332_vm3 = vcmask 39968  }
   0x7   :  { %401 = vmatmul.mubr.msk.f32.vlgmr.msra.gmra.mrb[0].mxu0 %vm43_vm1, %v33_v10  ;;  %v483_v14 = vpack.c.bf16 %v123_v13, %v122_v12  ;;  %v124_v15 = vld [vmem:[%s772_s4 + $0x30] sm:$0xff]  ;;  %v125_v16 = vld [vmem:[%s772_s4 + $0x38] sm:$0xff]  ;;  %v126_v18 = vld [vmem:[%s772_s4 + $0x40] sm:$0xff]  ;;  %s563_s14 = smov [#allocation2]   ;;  %vm338_vm4 = vcmask 48168  }
   0x8   :  { %470 = vmatprep.mubr.msk.f32.mxu0 %vm560_vm0, %v561_v4  ;;  %v486_v17 = vpack.c.bf16 %v125_v16, %v124_v15  ;;  %v127_v19 = vld [vmem:[%s772_s4 + $0x48] sm:$0xff]  ;;  %v128_v21 = vld [vmem:[%s772_s4 + $0x50] sm:$0xff]  ;;  %v129_v22 = vld [vmem:[%s772_s4 + $0x58] sm:$0xff]  ;;  %v311_v62 = vshrl.u32 %v310_v60, 7  ;;  %s346_s15 = sshll.u32 %s563_s14, 4  ;;  %s347_s15 = int_to_ptr.vmem [resolvable:$true] %s346_s15 }
   0x9   :  { %481 = vmatpush3.bf16.msra.mxu1 %v480_v11  ;;  %v489_v20 = vpack.c.bf16 %v127_v19, %v126_v18  ;;  %v492_v23 = vpack.c.bf16 %v129_v22, %v128_v21  ;;  %v130_v24 = vld [vmem:[%s772_s4 + $0x60] sm:$0xff]  ;;  %v131_v25 = vld [vmem:[%s772_s4 + $0x68] sm:$0xff]  ;;  %v132_v27 = vld [vmem:[%s772_s4 + $0x70] sm:$0xff]  ;;  %s535_s16 = scalar_lea.vmem %s347_s15, 128  ;;  %p540_p1 = scmp.lt.s32.totalorder %s347_s15, %s347_s15 }
   0xa   :  { %482 = vmatprep.subr.bf16.mxu1 %v559_v2  ;;  %v495_v26 = vpack.c.bf16 %v131_v25, %v130_v24  ;;  %v133_v28 = vld [vmem:[%s772_s4 + $0x78] sm:$0xff]  ;;  %v212_v30 = vld [vmem:[%s774_s6] sm:$0xff]  ;;  %v213_v31 = vld [vmem:[%s774_s6 + $0x8] sm:$0xff]  ;;  %v312_v0 = vsub.s32 0, %v311_v62  ;;  %p536_p0 = scmp.ne.s32.totalorder %s347_s15, %s535_s16  ;;  %p541_p2 = scmp.lt.s32.totalorder %s535_s16, %s535_s16 }
   0xb   :  { %v498_v29 = vpack.c.bf16 %v133_v28, %v132_v27  ;;  %v214_v32 = vld [vmem:[%s774_s6 + $0x10] sm:$0xff]  ;;  %v501_v33 = vpack.c.bf16 %v213_v31, %v212_v30  ;;  %v215_v34 = vld [vmem:[%s774_s6 + $0x18] sm:$0xff]  ;;  %v216_v36 = vld [vmem:[%s774_s6 + $0x20] sm:$0xff] }
   0xc   :  { %v504_v35 = vpack.c.bf16 %v215_v34, %v214_v32  ;;  %v217_v37 = vld [vmem:[%s774_s6 + $0x28] sm:$0xff]  ;;  %v218_v39 = vld [vmem:[%s774_s6 + $0x30] sm:$0xff]  ;;  %v219_v40 = vld [vmem:[%s774_s6 + $0x38] sm:$0xff]  ;;  %p542_p3 = por %p541_p2, %p540_p1 }
   0xd   :  { %484 = vmatpush3.bf16.msra.mxu1 %v483_v14  ;;  %502 = vmatpush3.bf16.msra.mxu0 %v501_v33  ;;  %v507_v38 = vpack.c.bf16 %v217_v37, %v216_v36  ;;  %v510_v41 = vpack.c.bf16 %v219_v40, %v218_v39  ;;  %v220_v42 = vld [vmem:[%s774_s6 + $0x40] sm:$0xff]  ;;  %v221_v43 = vld [vmem:[%s774_s6 + $0x48] sm:$0xff]  ;;  %v222_v50 = vld [vmem:[%s774_s6 + $0x50] sm:$0xff] }
   0xe   :  { %485 = vmatprep.subr.bf16.mxu1 %v559_v2  ;;  %503 = vmatprep.subr.bf16.mxu0 %v559_v2  ;;  %v513_v44 = vpack.c.bf16 %v221_v43, %v220_v42  ;;  %v354_v45 = vld [vmem:[%s771_s3] ss:$0 sm:$0xff]  ;;  %v223_v51 = vld [vmem:[%s774_s6 + $0x58] sm:$0xff]  ;;  %v225_v54 = vld [vmem:[%s774_s6 + $0x68] sm:$0xff]  ;;  %p543_p4 = pnand %p542_p3, %p536_p0 }
   0xf   :  { %v516_v52 = vpack.c.bf16 %v223_v51, %v222_v50  ;;  %v224_v53 = vld [vmem:[%s774_s6 + $0x60] sm:$0xff]  ;;  %v226_v56 = vld [vmem:[%s774_s6 + $0x70] sm:$0xff]  ;;  %v227_v57 = vld [vmem:[%s774_s6 + $0x78] sm:$0xff] }
  0x10   :  { %v519_v55 = vpack.c.bf16 %v225_v54, %v224_v53  ;;  %v522_v58 = vpack.c.bf16 %v227_v57, %v226_v56  ;;  %v308_v59 = vld [vmem:[%s769_s1] sm:$0xff] }
  0x11   :  { %487 = vmatpush3.bf16.msra.mxu1 %v486_v17  ;;  %505 = vmatpush3.bf16.msra.mxu0 %v504_v35  ;;  %v317_v61 = vmul.f32 -0.5, %v308_v59  ;;  %v305_v63 = vld [vmem:[%s776_s8] sm:$0x1] }
  0x12   :  { %488 = vmatprep.subr.bf16.mxu1 %v559_v2  ;;  %506 = vmatprep.subr.bf16.mxu0 %v559_v2  ;;  %v323_v3 = vrot.slane %v305_v63, %v312_v0  ;;  %v356_v6 = vld [vmem:[%s773_s5] ss:$0 sm:$0xff]  ;;  %v306_v11 = vmul.f32 1.442695, %v305_v63  ;;  %s562_s5 = smov 1  }
  0x13   :  { %v318_v1 = vmul.f32 %v317_v61, %v308_v59  ;;  %v357_v14 = vld [vmem:[%s775_s7] ss:$0 sm:$0xff] }
  0x15   :  { %490 = vmatpush3.bf16.msra.mxu1 %v489_v20  ;;  %508 = vmatpush3.bf16.msra.mxu0 %v507_v38  ;;  %v325_v4 = vsub.f32 %v318_v1, %v323_v3 }
  0x16   :  { %491 = vmatprep.subr.bf16.mxu1 %v559_v2  ;;  %509 = vmatprep.subr.bf16.mxu0 %v559_v2 }
  0x17   :  { %v358_v5 = vadd.f32 -0.9189385, %v325_v4 }
  0x19   :  { %493 = vmatpush3.bf16.msra.mxu1 %v492_v23  ;;  %511 = vmatpush3.bf16.msra.mxu0 %v510_v41 }
  0x1a   :  { %494 = vmatprep.subr.bf16.mxu1 %v559_v2  ;;  %512 = vmatprep.subr.bf16.mxu0 %v559_v2 }
  0x1d   :  { %496 = vmatpush3.bf16.msra.mxu1 %v495_v26  ;;  %514 = vmatpush3.bf16.msra.mxu0 %v513_v44 }
  0x1e   :  { %497 = vmatprep.subr.bf16.mxu1 %v559_v2  ;;  %515 = vmatprep.subr.bf16.mxu0 %v559_v2 }
  0x21   :  { %499 = vmatpush3.bf16.msra.mxu1 %v498_v29  ;;  %517 = vmatpush3.bf16.msra.mxu0 %v516_v52 }
  0x22   :  { %518 = vmatprep.subr.bf16.mxu0 %v559_v2 }
  0x25   :  { %520 = vmatpush3.bf16.msra.mxu0 %v519_v55 }
  0x26   :  { %521 = vmatprep.subr.bf16.mxu0 %v559_v2  ;;  %v328_v2 = vsel %vm327_vm2, %v358_v5, 0.0 }
  0x27   :  { %329 = vadd.xlane.f32.xlu0 %v328_v2 }
  0x29   :  { %523 = vmatpush3.bf16.msra.mxu0 %v522_v58 }
  0xb4   :  { %v330_v20 = vpop.xlane.xlu0 %329 }
  0xda   :  { %v113_v46 = vpop.f32.mrb[0].mxu0 }
  0xdb   :  { %v114_v47 = vadd.f32 %v354_v45, %v113_v46  ;;  %v402_v48 = vpop.f32.mrb[1].mxu0 }
  0xdd   :  { %529 = vtanh.f32 %v114_v47 }
  0xe7   :  { %v530_v49 = vpop.eup %529 }
  0xe8   :  { %436 = vmatmul.mubr.f32.vlgmr.msra.gmra.mrb[0].mxu1 %v530_v49 }
 0x1bb   :  { %v207_v7 = vpop.f32.mrb[0].mxu1 }
 0x1bc   :  { %v208_v8 = vadd.f32 %v356_v6, %v207_v7  ;;  %v437_v9 = vpop.f32.mrb[1].mxu1 }
 0x1be   :  { %531 = vtanh.f32 %v208_v8 }
 0x1bf   :  { %533 = vpow2.f32 %v306_v11 }
 0x1c8   :  { %v532_v10 = vpop.eup %531 }
 0x1c9   :  { %471 = vmatmul.mubr.f32.vlgmr.msra.gmra.mrb[2].mxu0 %v532_v10  ;;  %v534_v12 = vpop.eup %533 }
 0x1ca   :  { %v313_v13 = vrot.slane %v534_v12, %v312_v0 }
 0x1cc   :  { %v315_v15 = vmul.f32 %v313_v13, %v308_v59 }
 0x29c   :  { %v301_v16 = vpop.f32.mrb[2].mxu0 }
 0x29d   :  { %v302_v17 = vadd.f32 %v357_v14, %v301_v16  ;;  %v472_v18 = vpop.f32.mrb[3].mxu0 }
 0x29f   :  { %v316_v19 = vadd.f32 %v315_v15, %v302_v17  ;;  %335 = vrot.lane.b32.xlu0 %v302_v17, %s562_s5 }
 0x2a1   :  { %331 = vst.msk [vmem:[#allocation2] sm:$0xff] %vm327_vm2, %v316_v19 }
 0x2a2   :  { %333 = vst.msk [vmem:[#allocation2] sm:$0xff] %vm332_vm3, %v330_v20 }
 0x311   :  { %v336_v21 = vpop.permute.xlu0 %335 }
 0x312   :  { %339 = vst.msk [vmem:[#allocation2] sm:$0xff] %vm338_vm4, %v336_v21 }
 0x313   :  { %546 = shalt.err (!%p543_p4)
}
 0x314   :  { %s547_s18 = scalar_lea.hbm %s777_s9, 128 }
 0x315   :  { %p548_p5 = scmp.ne.s32.totalorder %s777_s9, %s547_s18  ;;  %p551_p6 = scmp.lt.u32.totalorder %s547_s18, %s777_s9 }
 0x317   :  { %p553_p7 = pnand %p551_p6, %p548_p5 }
 0x319   :  { %556 = shalt.err (!%p553_p7)
}
 0x31a   :  { %349 = dma.vmem_to_hbm [thread:$0]  %s347_s15, 128, %s777_s9, [#allocation3]  }
 0x31b   :  { %557 = dma.done.wait [#allocation3], 128  }
 0x31c   :  { %558 = vsyncadd [#allocation3], 4294967168 }
 0x31d   :  { %353 = vsyncpa [#allocation3], 1 }

</bundles_post_ra>
